<compile_context>
chip_gen: v5e
topology: v5e:2x2
jax: 0.10.0
libtpu: 0.0.40
codegen_flags: <defaults>
</compile_context>

<pallas_src>
import functools

import jax
import jax.numpy as jnp
from jax.experimental import pallas as pl
from jax.experimental.pallas import tpu as pltpu

SUBLANE = 8      # f32 sublane tile
MAX_TB = 8192    # max batch-tile rows: amortizes grid-step overhead, safe for VMEM


def _round_up(n, m):
    return ((n + m - 1) // m) * m


def _make_mlp_kernel(n_layers: int):
    """Fused MLP kernel body for `n_layers` (Linear + ReLU) layers.

    refs = (x_ref, w0, b0, w1, b1, ..., o_ref)
      x_ref : [TB, D0]       f32
      wi    : [Di, D(i+1)]   bf16  (resident in VMEM, loaded once)
      bi    : [1,  D(i+1)]   f32
      o_ref : [TB, DL]       f32
    """

    def kernel(*refs):
        x_ref = refs[0]
        o_ref = refs[-1]
        prm = refs[1:-1]

        h = x_ref[...]                                    # f32 activations
        for li in range(n_layers):
            w = prm[2 * li][...]                          # bf16 weights (MXU-native)
            b = prm[2 * li + 1][...]                      # f32 bias [1, D]
            # bf16 x bf16 -> f32 accumulate on the MXU; bias + ReLU in f32 on the VPU.
            h = jnp.dot(h.astype(jnp.bfloat16), w,
                        preferred_element_type=jnp.float32)
            h = jnp.maximum(h + b, 0.0)
            # TODO(synk): nn.Dropout(0.1) would mask here at train time; eval -> identity.
        o_ref[...] = h

    return kernel


def init_clust_encoder_params(key, dims, std=0.01):
    """Matches _init_weight: W ~ N(0, std), b = 0.  W is [in, out] (transposed vs nn.Linear)."""
    params = []
    for i in range(len(dims) - 1):
        key, sub = jax.random.split(key)
        w = std * jax.random.normal(sub, (dims[i], dims[i + 1]), dtype=jnp.float32)
        b = jnp.zeros((1, dims[i + 1]), dtype=jnp.float32)
        params.append((w, b))
    return params


@functools.partial(jax.jit, static_argnames=("n_layers",))
def _forward_impl(x, flat_params, n_layers):
    batch, d_in = x.shape
    d_out = flat_params[-1].shape[-1]

    # Parameters at their natural (small) shapes: weights bf16, biases f32 [1, D].
    prm = []
    for li in range(n_layers):
        prm.append(flat_params[2 * li].astype(jnp.bfloat16))
        prm.append(flat_params[2 * li + 1].reshape(1, -1).astype(jnp.float32))

    # Batch tiling: rows per tile is a multiple of 8 sublanes, chosen to minimize
    # zero padding while amortizing per-grid-step overhead.
    n_tiles = pl.cdiv(batch, MAX_TB)
    tb = _round_up(pl.cdiv(batch, n_tiles), SUBLANE)
    pb = n_tiles * tb

    x_p = x.astype(jnp.float32)
    if pb != batch:
        # Zero rows are exact (row-independent compute) and sliced off below.
        x_p = jnp.zeros((pb, d_in), jnp.float32).at[:batch].set(x_p)

    in_specs = [pl.BlockSpec((tb, d_in), lambda i: (i, 0))]
    for p in prm:
        # Constant block index + full-array block -> loaded once, VMEM-resident.
        in_specs.append(pl.BlockSpec(p.shape, lambda i: (0, 0)))
    out_specs = pl.BlockSpec((tb, d_out), lambda i: (i, 0))

    out = pl.pallas_call(
        _make_mlp_kernel(n_layers),
        out_shape=jax.ShapeDtypeStruct((pb, d_out), jnp.float32),
        grid=(n_tiles,),
        in_specs=in_specs,
        out_specs=out_specs,
        compiler_params=pltpu.CompilerParams(
            # Batch tiles are independent -> shard the grid across TCs on v7x.
            dimension_semantics=("parallel",)),
    )(x_p, *prm)

    return out[:batch]


def clust_encoder_forward(x, params, centroid=None):
    """z = encoder(x).  `centroid` is accepted but unused (as in the PyTorch forward)."""
    del centroid
    flat = tuple(t for pair in params for t in pair)
    return _forward_impl(x, flat, n_layers=len(params))


def _reference_forward(x, params):
    """Pure-JAX reference using the same bf16-matmul / f32-accumulate recipe."""
    h = x.astype(jnp.float32)
    for w, b in params:
        h = jnp.dot(h.astype(jnp.bfloat16), w.astype(jnp.bfloat16),
                    preferred_element_type=jnp.float32) + b.reshape(1, -1)
        h = jnp.maximum(h, 0.0)
    return h


if __name__ == "__main__":
    # dims = [32, 64, 48, 16]:
    #   Linear(32,64)+ReLU+Dropout, Linear(64,48)+ReLU+Dropout, Linear(48,16)+ReLU
    dims = [32, 64, 48, 16]
    num_cluster = 10

    key = jax.random.PRNGKey(0)
    k_x, k_c, k_p, k_x2, k_p2 = jax.random.split(key, 5)

    # --- Test 1: small batch, module-faithful init (std=0.01, zero bias). ---
    batch = 8
    x = jax.random.normal(k_x, (batch, dims[0]), dtype=jnp.float32)
    centroid = jax.random.normal(k_c, (num_cluster, dims[-1]), dtype=jnp.float32)
    params = init_clust_encoder_params(k_p, dims)

    z = jax.block_until_ready(clust_encoder_forward(x, params, centroid))
    ref = _reference_forward(x, params)
    assert z.shape == (batch, dims[-1])
    assert jnp.allclose(z, ref, atol=1e-4, rtol=1e-4)

    # --- Test 2: larger batch exercising multi-tile grid + batch padding. ---
    batch2 = 9001   # -> 2 tiles of 4504 rows, 7 zero-padded rows sliced off
    x2 = jax.random.normal(k_x2, (batch2, dims[0]), dtype=jnp.float32)
    params2 = init_clust_encoder_params(k_p2, dims, std=0.5)  # O(1) activations
    z2 = jax.block_until_ready(clust_encoder_forward(x2, params2))
    ref2 = _reference_forward(x2, params2)
    assert z2.shape == (batch2, dims[-1])
    assert jnp.allclose(z2, ref2, atol=1e-4, rtol=1e-4)

    print("KERNEL_OK")
</pallas_src>

<mosaic_0001>
module attributes {stable_mosaic.version = 11 : i64} {
  func.func @kernel(%arg0: i32, %arg1: memref<8x32xf32, #tpu.memory_space<vmem>>, %arg2: memref<32x64xbf16, #tpu.memory_space<vmem>>, %arg3: memref<1x64xf32, #tpu.memory_space<vmem>>, %arg4: memref<64x48xbf16, #tpu.memory_space<vmem>>, %arg5: memref<1x48xf32, #tpu.memory_space<vmem>>, %arg6: memref<48x16xbf16, #tpu.memory_space<vmem>>, %arg7: memref<1x16xf32, #tpu.memory_space<vmem>>, %arg8: memref<8x16xf32, #tpu.memory_space<vmem>>) attributes {dimension_semantics = [#tpu.dimension_semantics<parallel>], iteration_bounds = array<i64: 1>, scalar_prefetch = 0 : i64, scratch_operands = 0 : i64, tpu.core_type = #tpu.core_type<tc>, window_params = [{transform_indices = @transform_0, window_bounds = array<i64: 8, 32>}, {pipeline_mode = #tpu.pipeline_mode<synchronous>, transform_indices = @transform_1, window_bounds = array<i64: 32, 64>}, {pipeline_mode = #tpu.pipeline_mode<synchronous>, transform_indices = @transform_2, window_bounds = array<i64: 1, 64>}, {pipeline_mode = #tpu.pipeline_mode<synchronous>, transform_indices = @transform_3, window_bounds = array<i64: 64, 48>}, {pipeline_mode = #tpu.pipeline_mode<synchronous>, transform_indices = @transform_4, window_bounds = array<i64: 1, 48>}, {pipeline_mode = #tpu.pipeline_mode<synchronous>, transform_indices = @transform_5, window_bounds = array<i64: 48, 16>}, {pipeline_mode = #tpu.pipeline_mode<synchronous>, transform_indices = @transform_6, window_bounds = array<i64: 1, 16>}, {transform_indices = @transform_7, window_bounds = array<i64: 8, 16>}]} {
    %c0 = arith.constant 0 : index
    %c0_0 = arith.constant 0 : index
    %0 = vector.load %arg1[%c0, %c0_0] : memref<8x32xf32, #tpu.memory_space<vmem>>, vector<8x32xf32>
    %c0_1 = arith.constant 0 : index
    %c0_2 = arith.constant 0 : index
    %1 = vector.load %arg2[%c0_1, %c0_2] : memref<32x64xbf16, #tpu.memory_space<vmem>>, vector<32x64xbf16>
    %c0_3 = arith.constant 0 : index
    %c0_4 = arith.constant 0 : index
    %2 = vector.load %arg3[%c0_3, %c0_4] : memref<1x64xf32, #tpu.memory_space<vmem>>, vector<1x64xf32>
    %3 = arith.truncf %0 : vector<8x32xf32> to vector<8x32xbf16>
    %cst = arith.constant dense<0.000000e+00> : vector<8x64xf32>
    %4 = tpu.matmul %3, %1, %cst {dimension_numbers = #tpu.dot_dimension_numbers<[1], [0], [0], [1], [0, 0, 1, 1], [], []>} : vector<8x32xbf16>, vector<32x64xbf16>, vector<8x64xf32> -> vector<8x64xf32>
    %5 = vector.broadcast %2 : vector<1x64xf32> to vector<8x64xf32>
    %6 = arith.addf %4, %5 : vector<8x64xf32>
    %cst_5 = arith.constant 0.000000e+00 : f32
    %7 = vector.broadcast %cst_5 : f32 to vector<8x64xf32>
    %8 = arith.maximumf %6, %7 : vector<8x64xf32>
    %c0_6 = arith.constant 0 : index
    %c0_7 = arith.constant 0 : index
    %9 = vector.load %arg4[%c0_6, %c0_7] : memref<64x48xbf16, #tpu.memory_space<vmem>>, vector<64x48xbf16>
    %c0_8 = arith.constant 0 : index
    %c0_9 = arith.constant 0 : index
    %10 = vector.load %arg5[%c0_8, %c0_9] : memref<1x48xf32, #tpu.memory_space<vmem>>, vector<1x48xf32>
    %11 = arith.truncf %8 : vector<8x64xf32> to vector<8x64xbf16>
    %cst_10 = arith.constant dense<0.000000e+00> : vector<8x48xf32>
    %12 = tpu.matmul %11, %9, %cst_10 {dimension_numbers = #tpu.dot_dimension_numbers<[1], [0], [0], [1], [0, 0, 1, 1], [], []>} : vector<8x64xbf16>, vector<64x48xbf16>, vector<8x48xf32> -> vector<8x48xf32>
    %13 = vector.broadcast %10 : vector<1x48xf32> to vector<8x48xf32>
    %14 = arith.addf %12, %13 : vector<8x48xf32>
    %cst_11 = arith.constant 0.000000e+00 : f32
    %15 = vector.broadcast %cst_11 : f32 to vector<8x48xf32>
    %16 = arith.maximumf %14, %15 : vector<8x48xf32>
    %c0_12 = arith.constant 0 : index
    %c0_13 = arith.constant 0 : index
    %17 = vector.load %arg6[%c0_12, %c0_13] : memref<48x16xbf16, #tpu.memory_space<vmem>>, vector<48x16xbf16>
    %c0_14 = arith.constant 0 : index
    %c0_15 = arith.constant 0 : index
    %18 = vector.load %arg7[%c0_14, %c0_15] : memref<1x16xf32, #tpu.memory_space<vmem>>, vector<1x16xf32>
    %19 = arith.truncf %16 : vector<8x48xf32> to vector<8x48xbf16>
    %cst_16 = arith.constant dense<0.000000e+00> : vector<8x16xf32>
    %20 = tpu.matmul %19, %17, %cst_16 {dimension_numbers = #tpu.dot_dimension_numbers<[1], [0], [0], [1], [0, 0, 1, 1], [], []>} : vector<8x48xbf16>, vector<48x16xbf16>, vector<8x16xf32> -> vector<8x16xf32>
    %21 = vector.broadcast %18 : vector<1x16xf32> to vector<8x16xf32>
    %22 = arith.addf %20, %21 : vector<8x16xf32>
    %cst_17 = arith.constant 0.000000e+00 : f32
    %23 = vector.broadcast %cst_17 : f32 to vector<8x16xf32>
    %24 = arith.maximumf %22, %23 : vector<8x16xf32>
    %c0_18 = arith.constant 0 : index
    %c0_19 = arith.constant 0 : index
    %25 = vector.load %arg8[%c0_18, %c0_19] : memref<8x16xf32, #tpu.memory_space<vmem>>, vector<8x16xf32>
    tpu.vector_store %arg8[%c0_18, %c0_19], %24 {strides = array<i32>} : memref<8x16xf32, #tpu.memory_space<vmem>>, vector<8x16xf32>,
    return
  }
  func.func @transform_0(%arg0: i32) -> (i32, i32) {
    %c0_i32 = arith.constant 0 : i32
    %c0_i32_0 = arith.constant 0 : i32
    return %arg0, %c0_i32 : i32, i32
  }
  func.func @transform_1(%arg0: i32) -> (i32, i32) {
    %c0_i32 = arith.constant 0 : i32
    %c0_i32_0 = arith.constant 0 : i32
    %c0_i32_1 = arith.constant 0 : i32
    return %c0_i32, %c0_i32_0 : i32, i32
  }
  func.func @transform_2(%arg0: i32) -> (i32, i32) {
    %c0_i32 = arith.constant 0 : i32
    %c0_i32_0 = arith.constant 0 : i32
    %c0_i32_1 = arith.constant 0 : i32
    return %c0_i32, %c0_i32_0 : i32, i32
  }
  func.func @transform_3(%arg0: i32) -> (i32, i32) {
    %c0_i32 = arith.constant 0 : i32
    %c0_i32_0 = arith.constant 0 : i32
    %c0_i32_1 = arith.constant 0 : i32
    return %c0_i32, %c0_i32_0 : i32, i32
  }
  func.func @transform_4(%arg0: i32) -> (i32, i32) {
    %c0_i32 = arith.constant 0 : i32
    %c0_i32_0 = arith.constant 0 : i32
    %c0_i32_1 = arith.constant 0 : i32
    return %c0_i32, %c0_i32_0 : i32, i32
  }
  func.func @transform_5(%arg0: i32) -> (i32, i32) {
    %c0_i32 = arith.constant 0 : i32
    %c0_i32_0 = arith.constant 0 : i32
    %c0_i32_1 = arith.constant 0 : i32
    return %c0_i32, %c0_i32_0 : i32, i32
  }
  func.func @transform_6(%arg0: i32) -> (i32, i32) {
    %c0_i32 = arith.constant 0 : i32
    %c0_i32_0 = arith.constant 0 : i32
    %c0_i32_1 = arith.constant 0 : i32
    return %c0_i32, %c0_i32_0 : i32, i32
  }
  func.func @transform_7(%arg0: i32) -> (i32, i32) {
    %c0_i32 = arith.constant 0 : i32
    %c0_i32_0 = arith.constant 0 : i32
    return %arg0, %c0_i32 : i32, i32
  }
}

</mosaic_0001>

<bundles_post_ra>
// kernel: _forward_impl.1
= control target key start
LH: loop header
LB: loop body
LE: loop exit
PB: predicated region body
PF: predicated region fallthrough
CT: control target
= control target key end

     0   :  { %s349_s0 = inlined_call_operand.vmem [shape: f32[8,32], index: 0, kind: input, shape index: {}]   ;;  %s350_s1 = inlined_call_operand.vmem [shape: bf16[32,64], index: 1, kind: input, shape index: {}]   ;;  %s351_s2 = inlined_call_operand.vmem [shape: f32[1,64], index: 2, kind: input, shape index: {}]   ;;  %s352_s3 = inlined_call_operand.vmem [shape: bf16[64,48], index: 3, kind: input, shape index: {}]   ;;  %s353_s4 = inlined_call_operand.vmem [shape: f32[1,48], index: 4, kind: input, shape index: {}]   ;;  %s354_s5 = inlined_call_operand.vmem [shape: bf16[48,16], index: 5, kind: input, shape index: {}]   ;;  %s355_s6 = inlined_call_operand.vmem [shape: f32[1,16], index: 6, kind: input, shape index: {}]   ;;  %s356_s7 = inlined_call_operand.hbm [shape: f32[8,16], index: 7, kind: output, shape index: {}]  }
   0x1   :  { %v228_v0 = vld [vmem:[%s350_s1 + $0x8] sm:$0xff]  ;;  %v227_v1 = vld [vmem:[%s350_s1] sm:$0xff]  ;;  %v232_v2 = vld [vmem:[%s352_s3 + $0x18] sm:$0xff] }
   0x2   :  { %60 = vmatpush.bf16.msra.mxu0 %v228_v0  ;;  %v28_v3 = vld [vmem:[%s349_s0] sm:$0xff]  ;;  %113 = vmatpush.bf16.msra.mxu1 %v232_v2  ;;  %v231_v4 = vld [vmem:[%s352_s3 + $0x10] sm:$0xff] }
   0x3   :  { %12 = vsyncpa [#allocation3], 0  ;;  %v34_v5 = vpack.c.bf16 %v28_v3, %v28_v3  ;;  %vm50_vm0 = vcmask 261120   ;;  %v230_v6 = vld [vmem:[%s352_s3 + $0x8] sm:$0xff]  ;;  %v229_v7 = vld [vmem:[%s352_s3] sm:$0xff]  ;;  %vm105_vm1 = vcmask 523264  }
   0x4   :  { %v235_v8 = vld [vmem:[%s354_s5 + $0x10] sm:$0xff]  ;;  %v237_v9 = vld [vmem:[%s351_s2] ss:$0 sm:$0xff]  ;;  %v234_v15 = vld [vmem:[%s354_s5 + $0x8] sm:$0xff]  ;;  %vm152_vm2 = vcmask 392192   ;;  %s266_s23 = smov [#allocation2]  }
   0x5   :  { %161 = vmatpush.bf16.msra.mxu2 %v235_v8  ;;  %v233_v16 = vld [vmem:[%s354_s5] sm:$0xff]  ;;  %s177_s24 = sshll.u32 %s266_s23, 4  ;;  %s179_s26 = sshll.u32 %s356_s7, 4  ;;  %vm170_vm3 = vcmask 130048   ;;  %s178_s24 = int_to_ptr.vmem [resolvable:$true] %s177_s24  ;;  %s180_s26 = int_to_ptr.hbm [resolvable:$true] %s179_s26 }
   0x6   :  { %61 = vmatpush.bf16.msra.mxu0 %v227_v1  ;;  %114 = vmatpush.bf16.msra.mxu1 %v231_v4  ;;  %v238_v17 = vld [vmem:[%s353_s4] ss:$0 sm:$0xff] }
   0x7   :  { %v239_v23 = vld [vmem:[%s355_s6] ss:$0 sm:$0xff] }
   0x9   :  { %196 = vmatmul.msk.bf16.vlgmr.msra.gmra.mxu0 %vm50_vm0, %v34_v5  ;;  %162 = vmatpush.bf16.msra.mxu2 %v234_v15 }
   0xa   :  { %115 = vmatpush.bf16.msra.mxu1 %v230_v6 }
   0xd   :  { %163 = vmatpush.bf16.msra.mxu2 %v233_v16 }
   0xe   :  { %116 = vmatpush.bf16.msra.mxu1 %v229_v7 }
  0x86   :  { %v63_v10 = vpop.f32.mrf.mxu0 }
  0x87   :  { %v64_v11 = vadd.f32 %v237_v9, %v63_v10 }
  0x89   :  { %v67_v12 = vmax.f32 %v64_v11, 0.0 }
  0x8b   :  { %v77_v13 = vpack.c.bf16 %v67_v12, %v67_v12 }
  0x8d   :  { %213 = vmatmul.msk.bf16.vlgmr.msra.gmra.mxu1 %vm105_vm1, %v77_v13 }
  0x8e   :  { %v65_v14 = vpop.f32.mrf.mxu0 }
 0x10a   :  { %v118_v18 = vpop.f32.mrf.mxu1 }
 0x10b   :  { %v119_v19 = vadd.f32 %v238_v17, %v118_v18 }
 0x10d   :  { %v122_v20 = vmax.f32 %v119_v19, 0.0 }
 0x10f   :  { %v130_v21 = vpack.c.bf16 %v122_v20, %v122_v20 }
 0x111   :  { %226 = vmatmul.msk.bf16.vlgmr.msra.gmra.mxu2 %vm152_vm2, %v130_v21 }
 0x112   :  { %v120_v22 = vpop.f32.mrf.mxu1 }
 0x194   :  { %v165_v24 = vpop.f32.mrf.mxu2 }
 0x195   :  { %v166_v25 = vadd.f32 %v239_v23, %v165_v24 }
 0x197   :  { %v169_v26 = vmax.f32 %v166_v25, 0.0 }
 0x199   :  { %171 = vst.msk [vmem:[#allocation2] sm:$0xff] %vm170_vm3, %v169_v26 }
 0x19a   :  { %182 = dma.vmem_to_hbm [thread:$0]  %s178_s24, 128, %s180_s26, [#allocation3]  }
 0x19c   :  { %v167_v27 = vpop.f32.mrf.mxu2 }
 0x19d   :  { %264 = dma.done.wait [#allocation3], 128  }
 0x19e   :  { %265 = vsyncadd [#allocation3], 4294967168 }
 0x19f   :  { %187 = vsyncpa [#allocation3], 1 }

</bundles_post_ra>
